<compile_context>
chip_gen: v6e
topology: v6e:2x2x1
jax: 0.10.0
libtpu: 0.0.40
codegen_flags: <defaults>
</compile_context>

<pallas_src>
import functools

import jax
import jax.numpy as jnp
import numpy as np
from jax import lax
from jax.experimental import pallas as pl
from jax.experimental.pallas import tpu as pltpu


# ---------------------------------------------------------------------------
# Fused kernel: one batch block (BB batches) per grid step.
#   x_ref:    (BB, P, R, F)       VMEM
#   adj_ref:  (BB, N, N)          VMEM
#   wf_ref:   (T, K*P)            VMEM   wf[t, k*P + p] = w[t, p, k]
#   bias_ref: (T, 1, 1, F_out)    VMEM   bias broadcast along lanes
#   sblk_ref: (L*T, N)            VMEM   S_blk  = kron(I_L, s)
#   sblkT_ref:(N, L*T)            VMEM   S_blk^T
#   ox_ref:   (BB, T, R, F_out)   VMEM out
#   oa_ref:   (BB, L*T, L*T)      VMEM out
# ---------------------------------------------------------------------------
def _fused_kernel(x_ref, adj_ref, wf_ref, bias_ref, sblk_ref, sblkT_ref,
                  ox_ref, oa_ref, *, P, T, K, pad, F_out, BB):
    # ----------------- conv path: one im2col + ONE MXU dot per step --------
    xb = x_ref[...]                                        # (BB, P, R, F)
    if pad > 0:
        z = jnp.zeros(xb.shape[:-1] + (pad,), xb.dtype)
        xp = jnp.concatenate([z, xb, z], axis=-1)          # (BB, P, R, F+2*pad)
    else:
        xp = xb
    # im2col with the contraction index (k*P + p) leading, matching wf layout.
    pieces = []
    for k in range(K):                                     # K lane-shift slices total
        xpk = xp[:, :, :, k:k + F_out]                     # (BB, P, R, F_out)
        for p in range(P):
            pieces.append(xpk[:, p][None])                 # (1, BB, R, F_out)
    col = jnp.concatenate(pieces, axis=0)                  # (K*P, BB, R, F_out)
    acc = lax.dot_general(wf_ref[...], col,
                          (((1,), (0,)), ((), ())),
                          preferred_element_type=jnp.float32)  # (T, BB, R, F_out)
    acc = acc + bias_ref[...]                              # broadcast bias add
    for b in range(BB):                                    # BB consolidated stores
        ox_ref[b] = acc[:, b]

    # ----------------- adjacency path: dense kron form on the MXU ----------
    # out[b] = S_blk @ adj[b] @ S_blk^T  (exactly the block-diagonal pooling).
    sblkT = sblkT_ref[...]                                 # (N, LT)
    sblk = sblk_ref[...]                                   # (LT, N)
    for b in range(BB):                                    # BB is capped small (<=8)
        right = jnp.dot(adj_ref[b], sblkT,
                        preferred_element_type=jnp.float32)    # (N, LT)
        oa_ref[b] = jnp.dot(sblk, right,
                            preferred_element_type=jnp.float32)  # (LT, LT), one store


# ---------------------------------------------------------------------------
# VMEM sizing / batch-block selection.
# ---------------------------------------------------------------------------
def _step_vmem_bytes(BB, *, P, R, F, N, T, K, F_out, LT, pad):
    f32 = 4
    Fp = F + 2 * pad
    io_blocks = (BB * P * R * F            # x block
                 + BB * N * N              # adj block
                 + BB * T * R * F_out      # conv out block
                 + BB * LT * LT)           # pooled adj out block
    params = T * K * P + T * F_out + 2 * LT * N
    interm = (BB * P * R * Fp              # padded x
              + K * P * BB * R * F_out     # im2col
              + T * BB * R * F_out         # conv accumulator
              + N * LT)                    # right-contracted adj (per-b)
    # inputs/outputs are double-buffered by the Pallas pipeline
    return f32 * (2 * io_blocks + params + interm)


def _pick_batch_block(B, step_bytes_fn, vmem_budget, min_steps=4, cap=8):
    # Guarantee >= min_steps grid steps when B allows it (v7x 2-TC sharding +
    # pipelining), then shrink BB until the per-step blocks fit the budget.
    bb = max(1, min(cap, B // min_steps))
    while B % bb:
        bb -= 1
    while bb > 1 and step_bytes_fn(bb) > vmem_budget:
        bb -= 1
        while B % bb:
            bb -= 1
    return bb


# ---------------------------------------------------------------------------
# Forward pass.  All wrapper reshapes of x / outputs are metadata-only; the
# parameter massaging (wf, S_blk, bias) is tiny.
# ---------------------------------------------------------------------------
def lead_specific_patch_pool(x, adj, params, per_lead, after_lead,
                             kernel_size=3, padding=1):
    weight, bias, re_param = params["weight"], params["bias"], params["re_param"]
    B, N, F = x.shape
    assert N % per_lead == 0, "num_nodes must be divisible by per_lead"
    assert adj.shape == (B, N, N)

    P, T, K = per_lead, after_lead, kernel_size
    R = N // P                      # patches per conv row
    L = N // P                      # diagonal blocks in adj
    LT = L * T
    F_out = F + 2 * padding - K + 1

    # Free reshape (no data movement).
    x4 = x.reshape(B, P, R, F)

    # Tiny parameter massaging (wrapper-side, negligible).
    w3 = weight.reshape(T, P, K)
    wf = jnp.transpose(w3, (0, 2, 1)).reshape(T, K * P)        # wf[t,k*P+p]=w[t,p,k]
    s = jnp.matmul(weight, re_param).reshape(T, P)             # (T, P)
    sblk = jnp.kron(jnp.eye(L, dtype=s.dtype), s)              # (LT, N)
    sblkT = sblk.T                                             # (N, LT)
    bias4 = jnp.broadcast_to(
        bias.reshape(T, 1, 1, 1).astype(jnp.float32), (T, 1, 1, F_out))

    vmem_budget = 32 * 1024 * 1024            # safe on v7x (64 MiB/TC)
    step_bytes = functools.partial(_step_vmem_bytes, P=P, R=R, F=F, N=N, T=T,
                                   K=K, F_out=F_out, LT=LT, pad=padding)
    BB = _pick_batch_block(B, step_bytes, vmem_budget)
    grid = (B // BB,)

    kernel = functools.partial(_fused_kernel, P=P, T=T, K=K,
                               pad=padding, F_out=F_out, BB=BB)

    flops = 2 * B * T * R * F_out * K * P + 2 * B * N * LT * (N + LT)
    bytes_accessed = 4 * (B * P * R * F + B * N * N + B * T * R * F_out
                          + B * LT * LT + T * K * P + T * F_out + 2 * LT * N)

    out_x, out_adj = pl.pallas_call(
        kernel,
        out_shape=(
            jax.ShapeDtypeStruct((B, T, R, F_out), jnp.float32),
            jax.ShapeDtypeStruct((B, LT, LT), jnp.float32),
        ),
        grid=grid,
        in_specs=[
            pl.BlockSpec((BB, P, R, F), lambda i: (i, 0, 0, 0)),      # x4
            pl.BlockSpec((BB, N, N), lambda i: (i, 0, 0)),            # adj
            pl.BlockSpec((T, K * P), lambda i: (0, 0)),               # wf
            pl.BlockSpec((T, 1, 1, F_out), lambda i: (0, 0, 0, 0)),   # bias
            pl.BlockSpec((LT, N), lambda i: (0, 0)),                  # S_blk
            pl.BlockSpec((N, LT), lambda i: (0, 0)),                  # S_blk^T
        ],
        out_specs=(
            pl.BlockSpec((BB, T, R, F_out), lambda i: (i, 0, 0, 0)),
            pl.BlockSpec((BB, LT, LT), lambda i: (i, 0, 0)),
        ),
        compiler_params=pltpu.CompilerParams(
            dimension_semantics=("parallel",),
            vmem_limit_bytes=40 * 1024 * 1024,
        ),
        cost_estimate=pl.CostEstimate(flops=int(flops), transcendentals=0,
                                      bytes_accessed=int(bytes_accessed)),
    )(x4, adj, wf, bias4, sblk, sblkT)

    # Free reshape to the module's output shapes (adj output is already final).
    pooled_x = out_x.reshape(B, T * R, F_out)
    pooled_adj = out_adj
    return pooled_x, pooled_adj


if __name__ == "__main__":
    # Small, module-consistent shapes.
    per_lead, after_lead, kernel_size, padding = 4, 2, 3, 1
    num_leads = 3
    B, N, F = 2, num_leads * per_lead, 16    # N divisible by per_lead

    key = jax.random.PRNGKey(0)
    k1, k2, k3, k4, k5 = jax.random.split(key, 5)
    x = jax.random.normal(k1, (B, N, F), dtype=jnp.float32)
    adj = jax.random.normal(k2, (B, N, N), dtype=jnp.float32)
    params = {
        # Conv2d(in=per_lead, out=after_lead, kernel=(1, K)) weight / bias
        "weight": 0.1 * jax.random.normal(
            k3, (after_lead, per_lead, 1, kernel_size), dtype=jnp.float32),
        "bias": 0.1 * jax.random.normal(k4, (after_lead,), dtype=jnp.float32),
        # re_param is uninitialized in PyTorch; init deterministically here.
        "re_param": 0.1 * jax.random.normal(
            k5, (kernel_size, 1), dtype=jnp.float32),
    }

    pooled_x, pooled_adj = lead_specific_patch_pool(
        x, adj, params, per_lead, after_lead, kernel_size, padding)
    jax.block_until_ready((pooled_x, pooled_adj))

    # --- pure-JAX reference check ---
    x4 = x.reshape(B, per_lead, N // per_lead, F)
    ref_conv = jax.lax.conv_general_dilated(
        x4, params["weight"], window_strides=(1, 1),
        padding=((0, 0), (padding, padding)),
        dimension_numbers=("NCHW", "OIHW", "NCHW"),
    ) + params["bias"][None, :, None, None]
    F_out = F + 2 * padding - kernel_size + 1
    ref_pooled_x = ref_conv.reshape(B, -1, F_out)

    s = jnp.matmul(params["weight"], params["re_param"]).reshape(
        after_lead, per_lead)
    L = N // per_lead
    adj5 = adj.reshape(B, L, per_lead, L, per_lead)
    ref_pooled_adj = jnp.einsum("tp,blpmq,uq->bltmu", s, adj5, s).reshape(
        B, L * after_lead, L * after_lead)

    np.testing.assert_allclose(np.asarray(pooled_x), np.asarray(ref_pooled_x),
                               rtol=1e-4, atol=1e-4)
    np.testing.assert_allclose(np.asarray(pooled_adj),
                               np.asarray(ref_pooled_adj),
                               rtol=1e-4, atol=1e-4)
    print("KERNEL_OK")
</pallas_src>

<mosaic_0001>
module attributes {stable_mosaic.version = 11 : i64} {
  func.func @_fused_kernel(%arg0: i32, %arg1: memref<1x4x3x16xf32, #tpu.memory_space<vmem>>, %arg2: memref<1x12x12xf32, #tpu.memory_space<vmem>>, %arg3: memref<2x12xf32, #tpu.memory_space<vmem>>, %arg4: memref<2x1x1x16xf32, #tpu.memory_space<vmem>>, %arg5: memref<6x12xf32, #tpu.memory_space<vmem>>, %arg6: memref<12x6xf32, #tpu.memory_space<vmem>>, %arg7: memref<1x2x3x16xf32, #tpu.memory_space<vmem>>, %arg8: memref<1x6x6xf32, #tpu.memory_space<vmem>>) attributes {dimension_semantics = [#tpu.dimension_semantics<parallel>], iteration_bounds = array<i64: 2>, scalar_prefetch = 0 : i64, scratch_operands = 0 : i64, tpu.core_type = #tpu.core_type<tc>, window_params = [{transform_indices = @transform_0, window_bounds = array<i64: 1, 4, 3, 16>}, {transform_indices = @transform_1, window_bounds = array<i64: 1, 12, 12>}, {pipeline_mode = #tpu.pipeline_mode<synchronous>, transform_indices = @transform_2, window_bounds = array<i64: 2, 12>}, {pipeline_mode = #tpu.pipeline_mode<synchronous>, transform_indices = @transform_3, window_bounds = array<i64: 2, 1, 1, 16>}, {pipeline_mode = #tpu.pipeline_mode<synchronous>, transform_indices = @transform_4, window_bounds = array<i64: 6, 12>}, {pipeline_mode = #tpu.pipeline_mode<synchronous>, transform_indices = @transform_5, window_bounds = array<i64: 12, 6>}, {transform_indices = @transform_6, window_bounds = array<i64: 1, 2, 3, 16>}, {transform_indices = @transform_7, window_bounds = array<i64: 1, 6, 6>}]} {
    %c0 = arith.constant 0 : index
    %c0_0 = arith.constant 0 : index
    %c0_1 = arith.constant 0 : index
    %c0_2 = arith.constant 0 : index
    %0 = vector.load %arg1[%c0, %c0_0, %c0_1, %c0_2] : memref<1x4x3x16xf32, #tpu.memory_space<vmem>>, vector<1x4x3x16xf32>
    %cst = arith.constant 0.000000e+00 : f32
    %1 = vector.broadcast %cst : f32 to vector<1x4x3x1xf32>
    %2 = tpu.concatenate %1, %0, %1 in 3 : vector<1x4x3x1xf32>, vector<1x4x3x16xf32>, vector<1x4x3x1xf32> -> vector<1x4x3x18xf32>
    %3 = vector.extract_strided_slice %2 {offsets = [0, 0, 0, 0], sizes = [1, 4, 3, 16], strides = [1, 1, 1, 1]} : vector<1x4x3x18xf32> to vector<1x4x3x16xf32>
    %4 = vector.extract_strided_slice %3 {offsets = [0, 0, 0, 0], sizes = [1, 1, 3, 16], strides = [1, 1, 1, 1]} : vector<1x4x3x16xf32> to vector<1x1x3x16xf32>
    %5 = vector.shape_cast %4 : vector<1x1x3x16xf32> to vector<1x3x16xf32>
    %6 = vector.shape_cast %5 : vector<1x3x16xf32> to vector<1x1x3x16xf32>
    %7 = vector.extract_strided_slice %3 {offsets = [0, 1, 0, 0], sizes = [1, 1, 3, 16], strides = [1, 1, 1, 1]} : vector<1x4x3x16xf32> to vector<1x1x3x16xf32>
    %8 = vector.shape_cast %7 : vector<1x1x3x16xf32> to vector<1x3x16xf32>
    %9 = vector.shape_cast %8 : vector<1x3x16xf32> to vector<1x1x3x16xf32>
    %10 = vector.extract_strided_slice %3 {offsets = [0, 2, 0, 0], sizes = [1, 1, 3, 16], strides = [1, 1, 1, 1]} : vector<1x4x3x16xf32> to vector<1x1x3x16xf32>
    %11 = vector.shape_cast %10 : vector<1x1x3x16xf32> to vector<1x3x16xf32>
    %12 = vector.shape_cast %11 : vector<1x3x16xf32> to vector<1x1x3x16xf32>
    %13 = vector.extract_strided_slice %3 {offsets = [0, 3, 0, 0], sizes = [1, 1, 3, 16], strides = [1, 1, 1, 1]} : vector<1x4x3x16xf32> to vector<1x1x3x16xf32>
    %14 = vector.shape_cast %13 : vector<1x1x3x16xf32> to vector<1x3x16xf32>
    %15 = vector.shape_cast %14 : vector<1x3x16xf32> to vector<1x1x3x16xf32>
    %16 = vector.extract_strided_slice %2 {offsets = [0, 0, 0, 1], sizes = [1, 4, 3, 16], strides = [1, 1, 1, 1]} : vector<1x4x3x18xf32> to vector<1x4x3x16xf32>
    %17 = vector.extract_strided_slice %16 {offsets = [0, 0, 0, 0], sizes = [1, 1, 3, 16], strides = [1, 1, 1, 1]} : vector<1x4x3x16xf32> to vector<1x1x3x16xf32>
    %18 = vector.shape_cast %17 : vector<1x1x3x16xf32> to vector<1x3x16xf32>
    %19 = vector.shape_cast %18 : vector<1x3x16xf32> to vector<1x1x3x16xf32>
    %20 = vector.extract_strided_slice %16 {offsets = [0, 1, 0, 0], sizes = [1, 1, 3, 16], strides = [1, 1, 1, 1]} : vector<1x4x3x16xf32> to vector<1x1x3x16xf32>
    %21 = vector.shape_cast %20 : vector<1x1x3x16xf32> to vector<1x3x16xf32>
    %22 = vector.shape_cast %21 : vector<1x3x16xf32> to vector<1x1x3x16xf32>
    %23 = vector.extract_strided_slice %16 {offsets = [0, 2, 0, 0], sizes = [1, 1, 3, 16], strides = [1, 1, 1, 1]} : vector<1x4x3x16xf32> to vector<1x1x3x16xf32>
    %24 = vector.shape_cast %23 : vector<1x1x3x16xf32> to vector<1x3x16xf32>
    %25 = vector.shape_cast %24 : vector<1x3x16xf32> to vector<1x1x3x16xf32>
    %26 = vector.extract_strided_slice %16 {offsets = [0, 3, 0, 0], sizes = [1, 1, 3, 16], strides = [1, 1, 1, 1]} : vector<1x4x3x16xf32> to vector<1x1x3x16xf32>
    %27 = vector.shape_cast %26 : vector<1x1x3x16xf32> to vector<1x3x16xf32>
    %28 = vector.shape_cast %27 : vector<1x3x16xf32> to vector<1x1x3x16xf32>
    %29 = vector.extract_strided_slice %2 {offsets = [0, 0, 0, 2], sizes = [1, 4, 3, 16], strides = [1, 1, 1, 1]} : vector<1x4x3x18xf32> to vector<1x4x3x16xf32>
    %30 = vector.extract_strided_slice %29 {offsets = [0, 0, 0, 0], sizes = [1, 1, 3, 16], strides = [1, 1, 1, 1]} : vector<1x4x3x16xf32> to vector<1x1x3x16xf32>
    %31 = vector.shape_cast %30 : vector<1x1x3x16xf32> to vector<1x3x16xf32>
    %32 = vector.shape_cast %31 : vector<1x3x16xf32> to vector<1x1x3x16xf32>
    %33 = vector.extract_strided_slice %29 {offsets = [0, 1, 0, 0], sizes = [1, 1, 3, 16], strides = [1, 1, 1, 1]} : vector<1x4x3x16xf32> to vector<1x1x3x16xf32>
    %34 = vector.shape_cast %33 : vector<1x1x3x16xf32> to vector<1x3x16xf32>
    %35 = vector.shape_cast %34 : vector<1x3x16xf32> to vector<1x1x3x16xf32>
    %36 = vector.extract_strided_slice %29 {offsets = [0, 2, 0, 0], sizes = [1, 1, 3, 16], strides = [1, 1, 1, 1]} : vector<1x4x3x16xf32> to vector<1x1x3x16xf32>
    %37 = vector.shape_cast %36 : vector<1x1x3x16xf32> to vector<1x3x16xf32>
    %38 = vector.shape_cast %37 : vector<1x3x16xf32> to vector<1x1x3x16xf32>
    %39 = vector.extract_strided_slice %29 {offsets = [0, 3, 0, 0], sizes = [1, 1, 3, 16], strides = [1, 1, 1, 1]} : vector<1x4x3x16xf32> to vector<1x1x3x16xf32>
    %40 = vector.shape_cast %39 : vector<1x1x3x16xf32> to vector<1x3x16xf32>
    %41 = vector.shape_cast %40 : vector<1x3x16xf32> to vector<1x1x3x16xf32>
    %42 = tpu.concatenate %6, %9, %12, %15, %19, %22, %25, %28, %32, %35, %38, %41 in 0 : vector<1x1x3x16xf32>, vector<1x1x3x16xf32>, vector<1x1x3x16xf32>, vector<1x1x3x16xf32>, vector<1x1x3x16xf32>, vector<1x1x3x16xf32>, vector<1x1x3x16xf32>, vector<1x1x3x16xf32>, vector<1x1x3x16xf32>, vector<1x1x3x16xf32>, vector<1x1x3x16xf32>, vector<1x1x3x16xf32> -> vector<12x1x3x16xf32>
    %c0_3 = arith.constant 0 : index
    %c0_4 = arith.constant 0 : index
    %43 = vector.load %arg3[%c0_3, %c0_4] : memref<2x12xf32, #tpu.memory_space<vmem>>, vector<2x12xf32>
    %cst_5 = arith.constant dense<0.000000e+00> : vector<2x1x3x16xf32>
    %44 = tpu.matmul %43, %42, %cst_5 {dimension_numbers = #tpu.dot_dimension_numbers<[1], [0], [0], [1, 2, 3], [0, 0, 1, 1, 1, 2, 1, 3], [], []>} : vector<2x12xf32>, vector<12x1x3x16xf32>, vector<2x1x3x16xf32> -> vector<2x1x3x16xf32>
    %c0_6 = arith.constant 0 : index
    %c0_7 = arith.constant 0 : index
    %c0_8 = arith.constant 0 : index
    %c0_9 = arith.constant 0 : index
    %45 = vector.load %arg4[%c0_6, %c0_7, %c0_8, %c0_9] : memref<2x1x1x16xf32, #tpu.memory_space<vmem>>, vector<2x1x1x16xf32>
    %46 = vector.broadcast %45 : vector<2x1x1x16xf32> to vector<2x1x3x16xf32>
    %47 = arith.addf %44, %46 : vector<2x1x3x16xf32>
    %48 = vector.shape_cast %47 : vector<2x1x3x16xf32> to vector<2x3x16xf32>
    %c0_10 = arith.constant 0 : index
    %c0_11 = arith.constant 0 : index
    %c0_12 = arith.constant 0 : index
    %c0_13 = arith.constant 0 : index
    %49 = vector.load %arg7[%c0_10, %c0_11, %c0_12, %c0_13] : memref<1x2x3x16xf32, #tpu.memory_space<vmem>>, vector<1x2x3x16xf32>
    %50 = vector.shape_cast %49 : vector<1x2x3x16xf32> to vector<2x3x16xf32>
    %51 = vector.shape_cast %48 : vector<2x3x16xf32> to vector<1x2x3x16xf32>
    tpu.vector_store %arg7[%c0_10, %c0_11, %c0_12, %c0_13], %51 {strides = array<i32>} : memref<1x2x3x16xf32, #tpu.memory_space<vmem>>, vector<1x2x3x16xf32>,
    %c0_14 = arith.constant 0 : index
    %c0_15 = arith.constant 0 : index
    %52 = vector.load %arg6[%c0_14, %c0_15] : memref<12x6xf32, #tpu.memory_space<vmem>>, vector<12x6xf32>
    %c0_16 = arith.constant 0 : index
    %c0_17 = arith.constant 0 : index
    %53 = vector.load %arg5[%c0_16, %c0_17] : memref<6x12xf32, #tpu.memory_space<vmem>>, vector<6x12xf32>
    %c0_18 = arith.constant 0 : index
    %c0_19 = arith.constant 0 : index
    %c0_20 = arith.constant 0 : index
    %54 = vector.load %arg2[%c0_18, %c0_19, %c0_20] : memref<1x12x12xf32, #tpu.memory_space<vmem>>, vector<1x12x12xf32>
    %55 = vector.shape_cast %54 : vector<1x12x12xf32> to vector<12x12xf32>
    %cst_21 = arith.constant dense<0.000000e+00> : vector<12x6xf32>
    %56 = tpu.matmul %55, %52, %cst_21 {dimension_numbers = #tpu.dot_dimension_numbers<[1], [0], [0], [1], [0, 0, 1, 1], [], []>} : vector<12x12xf32>, vector<12x6xf32>, vector<12x6xf32> -> vector<12x6xf32>
    %cst_22 = arith.constant dense<0.000000e+00> : vector<6x6xf32>
    %57 = tpu.matmul %53, %56, %cst_22 {dimension_numbers = #tpu.dot_dimension_numbers<[1], [0], [0], [1], [0, 0, 1, 1], [], []>} : vector<6x12xf32>, vector<12x6xf32>, vector<6x6xf32> -> vector<6x6xf32>
    %c0_23 = arith.constant 0 : index
    %c0_24 = arith.constant 0 : index
    %c0_25 = arith.constant 0 : index
    %58 = vector.load %arg8[%c0_23, %c0_24, %c0_25] : memref<1x6x6xf32, #tpu.memory_space<vmem>>, vector<1x6x6xf32>
    %59 = vector.shape_cast %58 : vector<1x6x6xf32> to vector<6x6xf32>
    %60 = vector.shape_cast %57 : vector<6x6xf32> to vector<1x6x6xf32>
    tpu.vector_store %arg8[%c0_23, %c0_24, %c0_25], %60 {strides = array<i32>} : memref<1x6x6xf32, #tpu.memory_space<vmem>>, vector<1x6x6xf32>,
    return
  }
  func.func @transform_0(%arg0: i32) -> (i32, i32, i32, i32) {
    %c0_i32 = arith.constant 0 : i32
    %c0_i32_0 = arith.constant 0 : i32
    %c0_i32_1 = arith.constant 0 : i32
    %c0_i32_2 = arith.constant 0 : i32
    return %arg0, %c0_i32, %c0_i32_0, %c0_i32_1 : i32, i32, i32, i32
  }
  func.func @transform_1(%arg0: i32) -> (i32, i32, i32) {
    %c0_i32 = arith.constant 0 : i32
    %c0_i32_0 = arith.constant 0 : i32
    %c0_i32_1 = arith.constant 0 : i32
    return %arg0, %c0_i32, %c0_i32_0 : i32, i32, i32
  }
  func.func @transform_2(%arg0: i32) -> (i32, i32) {
    %c0_i32 = arith.constant 0 : i32
    %c0_i32_0 = arith.constant 0 : i32
    %c0_i32_1 = arith.constant 0 : i32
    return %c0_i32, %c0_i32_0 : i32, i32
  }
  func.func @transform_3(%arg0: i32) -> (i32, i32, i32, i32) {
    %c0_i32 = arith.constant 0 : i32
    %c0_i32_0 = arith.constant 0 : i32
    %c0_i32_1 = arith.constant 0 : i32
    %c0_i32_2 = arith.constant 0 : i32
    %c0_i32_3 = arith.constant 0 : i32
    return %c0_i32, %c0_i32_0, %c0_i32_1, %c0_i32_2 : i32, i32, i32, i32
  }
  func.func @transform_4(%arg0: i32) -> (i32, i32) {
    %c0_i32 = arith.constant 0 : i32
    %c0_i32_0 = arith.constant 0 : i32
    %c0_i32_1 = arith.constant 0 : i32
    return %c0_i32, %c0_i32_0 : i32, i32
  }
  func.func @transform_5(%arg0: i32) -> (i32, i32) {
    %c0_i32 = arith.constant 0 : i32
    %c0_i32_0 = arith.constant 0 : i32
    %c0_i32_1 = arith.constant 0 : i32
    return %c0_i32, %c0_i32_0 : i32, i32
  }
  func.func @transform_6(%arg0: i32) -> (i32, i32, i32, i32) {
    %c0_i32 = arith.constant 0 : i32
    %c0_i32_0 = arith.constant 0 : i32
    %c0_i32_1 = arith.constant 0 : i32
    %c0_i32_2 = arith.constant 0 : i32
    return %arg0, %c0_i32, %c0_i32_0, %c0_i32_1 : i32, i32, i32, i32
  }
  func.func @transform_7(%arg0: i32) -> (i32, i32, i32) {
    %c0_i32 = arith.constant 0 : i32
    %c0_i32_0 = arith.constant 0 : i32
    %c0_i32_1 = arith.constant 0 : i32
    return %arg0, %c0_i32, %c0_i32_0 : i32, i32, i32
  }
}

</mosaic_0001>

<bundles_post_ra>
// kernel: tpu_custom_call.1
= control target key start
LH: loop header
LB: loop body
LE: loop exit
PB: predicated region body
PF: predicated region fallthrough
CT: control target
= control target key end

     0   :  { %s1051_s24 = smov 0   ;;  %s1159_s0 = inlined_call_operand.vmem [shape: f32[2,4,3,16], index: 0, kind: input, shape index: {}]   ;;  %s1160_s1 = inlined_call_operand.vmem [shape: f32[2,12,12], index: 1, kind: input, shape index: {}]   ;;  %s1161_s2 = inlined_call_operand.vmem [shape: f32[2,12], index: 2, kind: input, shape index: {}]   ;;  %s1162_s3 = inlined_call_operand.vmem [shape: f32[2,1,1,16], index: 3, kind: input, shape index: {}]   ;;  %s1163_s4 = inlined_call_operand.vmem [shape: f32[6,12], index: 4, kind: input, shape index: {}]   ;;  %s1164_s5 = inlined_call_operand.vmem [shape: f32[12,6], index: 5, kind: input, shape index: {}]   ;;  %s1165_s6 = inlined_call_operand.vmem [shape: f32[2,2,3,16], index: 6, kind: output, shape index: {0}]   ;;  %s1166_s7 = inlined_call_operand.vmem [shape: f32[2,6,6], index: 7, kind: output, shape index: {1}]  }
   0x1 LB: > { %s916_s25 = sadd.s32 4294967295, %s998_s24   ;;  %p920_p0 = scmp.ge.s32.totalorder %s998_s24, 1  ;;  %s998_s24 = sphi %s1051_s24, %s18_s24  }
   0x2   : > { %p250_p1 = scmp.lt.s32.totalorder %s998_s24, 3 }
   0x4   : > { %p251_p2 = pnand %p920_p0, %p250_p1 }
   0x5   : > { %p291_p3 = scmp.lt.s32.totalorder (!%p251_p2), %s916_s25, 1  ;;  %s1000_s30 = smov (!%p251_p2), 1  }
   0x6   : > { %254 = sbr.rel (%p251_p2) target bundleno = 712 (0x2c8), region = 44  ;;  %s1002_s8 = smov (!%p251_p2), 126  }
   0x7   : > { %s1004_s9 = smov (!%p251_p2), 127   ;;  %s1007_s17 = smov (!%p251_p2), 32  }
   0x8   : > { %s1008_s22 = smov (!%p251_p2), 16   ;;  %s1009_s10 = smov (!%p251_p2), 112  }
   0x9   : > { %s1010_s11 = smov (!%p251_p2), 96  }
   0xb   : > { %s1168_s25 = smov (!%p291_p3, %s916_s25), 1  ;;  %v1001_v4 = vmov 1983009808   ;;  %v385_v6 = vlaneseq  ;;  %vm330_vm0 = vcmask 7168   ;;  %vm335_vm1 = vcmask 138240   ;;  %v651_v30 = vld [vmem:[%s1164_s5] sm:$0xff] }
   0xc   : > { %s939_s26 = sshll.u32 %s1168_s25, 4  ;;  %v383_v5 = vunpack.c.l.s4 %v1001_v4  ;;  %v1003_v23 = vmov 0.0   ;;  %vm550_vm2 = vcmask 1043456   ;;  %v652_v29 = vld [vmem:[%s1164_s5 + $0x8] sm:$0xf]  ;;  %vm546_vm3 = vcmask 97280  }
   0xd   : > { %s295_s29 = scalar_lea.vmem %s1159_s0, %s939_s26  ;;  %v386_v11 = vshrl.u32 %v385_v6, 7  ;;  %952 = vmatprep.subr.mxu0 %v1003_v23  ;;  %s300_s16 = scalar_lea.vmem %s1160_s1, %s939_s26  ;;  %959 = vmatprep.subr.msk.mxu1 %vm550_vm2, %v652_v29  ;;  %v1005_v36 = vmov 1934713408   ;;  %vm1006_vm4 = vmmov 0   ;;  %v928_v56 = vld [vmem:[%s1162_s3] ss:$0 sm:$0xff] }
   0xe   : > { %v312_v0 = vld [vmem:[%s295_s29 + $0x8] sm:$0x7]  ;;  %v310_v1 = vld [vmem:[%s295_s29] sm:$0x7]  ;;  %v313_v2 = vld [vmem:[%s295_s29 + $0xc] sm:$0x7]  ;;  %v384_v10 = vunpack.c.0.s8 %v383_v5  ;;  %960 = vmatpush3.msk.msra.mxu1 %vm550_vm2, %v652_v29  ;;  %v416_v37 = vunpack.c.l.s4 %v1005_v36  ;;  %956 = vmatprep.mubr.msk.f32.mxu0 %vm1006_vm4, %v1003_v23 }
   0xf   : > { %322 = vrot.lane.b32.xlu1 %v312_v0, %s1000_s30  ;;  %318 = vrot.lane.b32.xlu0 %v310_v1, %s1000_s30  ;;  %v311_v3 = vld [vmem:[%s295_s29 + $0x4] sm:$0x7]  ;;  %v655_v32 = vld [vmem:[%s300_s16 + $0x8] sm:$0xf]  ;;  %vm497_vm5 = vcmask 130048   ;;  %vm500_vm6 = vcmask 261120  }
  0x10   : > { %v1071_v18 = vsub.s32 %v384_v10, %v386_v11  ;;  %v654_v31 = vld [vmem:[%s300_s16] sm:$0xff]  ;;  %961 = vmatprep.subr.mxu1 %v651_v30  ;;  %v417_v42 = vunpack.c.0.s8 %v416_v37  ;;  %s941_s29 = sshll.u32 %s1168_s25, 3  ;;  %vm816_vm7 = vcmask 46080   ;;  %vm648_vm8 = vcmask 124928  }
  0x11   : > { %963 = vmatprep.mubr.msk.f32.mxu1 %vm546_vm3, %v654_v31  ;;  %962 = vmatpush3.msra.mxu1 %v651_v30  ;;  %v929_v57 = vld [vmem:[%s1162_s3 + $0x1] ss:$0 sm:$0xff]  ;;  %s305_s13 = scalar_lea.vmem %s1165_s6, %s941_s29 }
  0x12   : > { %964 = vmatmul.mubr.msk.f32.vlgmr.msra.gmra.mxu1 %vm546_vm3, %v655_v32  ;;  %v1101_v49 = vsub.s32 %v417_v42, %v386_v11  ;;  %v510_v58 = vrot.slane %v928_v56, %v1071_v18  ;;  %v518_v59 = vrot.slane %v929_v57, %v1071_v18 }
  0x13   : > { %324 = vrot.lane.b32.xlu1 %v313_v2, %s1000_s30  ;;  %320 = vrot.lane.b32.xlu0 %v311_v3, %s1000_s30 }
  0x14   : > { %v519_v62 = vcombine.low %v510_v58, %v518_v59  ;;  %v520_v6 = vcombine.high %v510_v58, %v518_v59 }
  0x16   : > { %v527_v5 = vrot.slane %v519_v62, %v1101_v49  ;;  %v535_v11 = vrot.slane %v520_v6, %v1101_v49 }
  0x18   : > { %v528_v10 = vcombine.high %v527_v5, %v1003_v23 }
  0x81   : > { %v323_v7 = vpop.permute.xlu1 %322  ;;  %v319_v8 = vpop.permute.xlu0 %318 }
  0x82   : > { %v333_v9 = vsel %vm330_vm0, 0.0, %v323_v7  ;;  %v331_v12 = vsel %vm330_vm0, 0.0, %v319_v8 }
  0x83   : > { %v338_v13 = vsel %vm335_vm1, %v333_v9, 0.0  ;;  %v336_v14 = vsel %vm335_vm1, %v331_v12, 0.0 }
  0x84   : > { %v381_v15 = vcombine.low %v336_v14, %v338_v13  ;;  %356 = vrot.lane.b32.xlu0 %v336_v14, %s1002_s8 }
  0x85   : > { %v325_v16 = vpop.permute.xlu1 %324  ;;  %v321_v17 = vpop.permute.xlu0 %320 }
  0x86   : > { %v334_v19 = vsel %vm330_vm0, 0.0, %v325_v16  ;;  %v332_v20 = vsel %vm330_vm0, 0.0, %v321_v17  ;;  %v1079_v25 = vrot.slane %v381_v15, %v1071_v18 }
  0x87   : > { %v339_v21 = vsel %vm335_vm1, %v334_v19, 0.0  ;;  %v337_v22 = vsel %vm335_vm1, %v332_v20, 0.0 }
  0x88   : > { %v389_v24 = vcombine.low %v337_v22, %v339_v21  ;;  %362 = vrot.lane.b32.xlu0 %v338_v13, %s1002_s8  ;;  %359 = vrot.lane.b32.xlu1 %v337_v22, %s1002_s8 }
  0x8a   : > { %v396_v26 = vrot.slane %v389_v24, %v1071_v18 }
  0x8c   : > { %v413_v27 = vcombine.low %v1079_v25, %v396_v26  ;;  %v414_v28 = vcombine.high %v1079_v25, %v396_v26  ;;  %341 = vrot.lane.b32.xlu0 %v336_v14, %s1004_s9  ;;  %365 = vrot.lane.b32.xlu1 %v339_v21, %s1002_s8 }
  0x8e   : > { %v428_v1 = vrot.slane %v414_v28, %v1101_v49  ;;  %v421_v2 = vrot.slane %v413_v27, %v1101_v49  ;;  %v653_v27 = vld [vmem:[%s1163_s4] sm:$0x3f] }
  0x90   : > { %349 = vrot.lane.b32.xlu0 %v338_v13, %s1004_s9  ;;  %345 = vrot.lane.b32.xlu1 %v337_v22, %s1004_s9 }
  0x94   : > { %353 = vrot.lane.b32.xlu1 %v339_v21, %s1004_s9  ;;  %v368_v21 = vld [vmem:[%s1161_s2] sm:$0x3]  ;;  %s309_s9 = scalar_lea.vmem %s1166_s7, %s941_s29 }
  0xd2   : > { %v965_v16 = vpop.f32.mrf.mxu1 }
  0xd4   : > { %v731_v24 = vpop.f32.mrf.mxu1 }
  0xf6   : > { %v357_v33 = vpop.permute.xlu0 %356 }
  0xfa   : > { %v360_v34 = vpop.permute.xlu1 %359  ;;  %v363_v35 = vpop.permute.xlu0 %362 }
  0xfb   : > { %v448_v38 = vcombine.low %v357_v33, %v363_v35 }
  0xfd   : > { %v455_v43 = vrot.slane %v448_v38, %v1071_v18 }
  0xfe   : > { %v366_v39 = vpop.permute.xlu1 %365  ;;  %v342_v40 = vpop.permute.xlu0 %341 }
  0xff   : > { %v456_v41 = vcombine.low %v360_v34, %v366_v39 }
 0x101   : > { %v463_v44 = vrot.slane %v456_v41, %v1071_v18 }
 0x102   : > { %v346_v45 = vpop.permute.xlu1 %345  ;;  %v350_v46 = vpop.permute.xlu0 %349 }
 0x103   : > { %v464_v47 = vcombine.low %v455_v43, %v463_v44  ;;  %v465_v48 = vcombine.high %v455_v43, %v463_v44  ;;  %v397_v50 = vcombine.low %v342_v40, %v350_v46 }
 0x105   : > { %v480_v51 = vrot.slane %v465_v48, %v1101_v49  ;;  %v472_v52 = vrot.slane %v464_v47, %v1101_v49  ;;  %v404_v60 = vrot.slane %v397_v50, %v1071_v18 }
 0x106   : > { %v354_v53 = vpop.permute.xlu1 %353 }
 0x107   : > { %v405_v54 = vcombine.low %v346_v45, %v354_v53  ;;  %493 = vrot.lane.b32.xlu1 %v480_v51, %s1007_s17  ;;  %v473_v55 = vcombine.high %v472_v52, %v1003_v23 }
 0x109   : > { %v412_v61 = vrot.slane %v405_v54, %v1071_v18  ;;  %485 = vrot.lane.b32.xlu0 %v473_v55, %s1008_s22 }
 0x10b   : > { %v429_v63 = vcombine.low %v404_v60, %v412_v61  ;;  %v430_v0 = vcombine.high %v404_v60, %v412_v61 }
 0x10d   : > { %v444_v3 = vrot.slane %v430_v0, %v1101_v49  ;;  %v437_v4 = vrot.slane %v429_v63, %v1101_v49 }
 0x10f   : > { %v447_v7 = vcombine.low %v428_v1, %v444_v3  ;;  %v446_v8 = vcombine.high %v421_v2, %v437_v4  ;;  %v445_v9 = vcombine.low %v421_v2, %v437_v4 }
 0x111   : > { %491 = vrot.lane.b32.xlu1 %v447_v7, %s1007_s17  ;;  %483 = vrot.lane.b32.xlu0 %v446_v8, %s1008_s22 }
 0x115   : > { %537 = vrot.lane.b32.xlu0 %v528_v10, %s1008_s22  ;;  %541 = vrot.lane.b32.xlu1 %v535_v11, %s1007_s17 }
 0x179   : > { %v494_v13 = vpop.permute.xlu1 %493 }
 0x17b   : > { %v486_v12 = vpop.permute.xlu0 %485 }
 0x17c   : > { %v499_v14 = vsel %vm497_vm5, %v472_v52, %v486_v12 }
 0x17d   : > { %v502_v15 = vsel %vm500_vm6, %v499_v14, %v494_v13 }
 0x17e   : > { %953 = vmatpush3.msk.msra.mxu0 %vm550_vm2, %v502_v15 }
 0x17f   : > { %954 = vmatprep.subr.mxu0 %v1003_v23 }
 0x183   : > { %v492_v17 = vpop.permute.xlu1 %491  ;;  %v484_v19 = vpop.permute.xlu0 %483 }
 0x184   : > { %v498_v20 = vsel %vm497_vm5, %v445_v9, %v484_v19 }
 0x185   : > { %v501_v22 = vsel %vm500_vm6, %v498_v20, %v492_v17 }
 0x186   : > { %955 = vmatpush3.msra.mxu0 %v501_v22 }
 0x187   : > { %957 = vmatmul.mubr.msk.f32.vlgmr.msra.gmra.mxu0 %vm546_vm3, %v368_v21  ;;  %966 = vmatprep.subr.mxu0 %v1003_v23  ;;  %v538_v25 = vpop.permute.xlu0 %537  ;;  %v542_v26 = vpop.permute.xlu1 %541 }
 0x188   : > { %967 = vmatpush3.msk.msra.mxu0 %vm550_vm2, %v965_v16  ;;  %970 = vmatprep.mubr.msk.f32.mxu0 %vm1006_vm4, %v1003_v23  ;;  %v544_v28 = vsel %vm497_vm5, %v527_v5, %v538_v25 }
 0x189   : > { %968 = vmatprep.subr.mxu0 %v1003_v23  ;;  %v545_v29 = vsel %vm500_vm6, %v544_v28, %v542_v26 }
 0x18a   : > { %969 = vmatpush3.msra.mxu0 %v731_v24 }
 0x18b   : > { %971 = vmatmul.mubr.msk.f32.vlgmr.msra.gmra.mxu0 %vm546_vm3, %v653_v27 }
 0x247   : > { %v620_v30 = vpop.f32.mrf.mxu0 }
 0x248   : > { %v621_v31 = vadd.f32 %v620_v30, %v545_v29 }
 0x249   : > { %v958_v32 = vpop.f32.mrf.mxu0 }
 0x24a   : > { %625 = vrot.lane.b32.xlu1 %v621_v31, %s1009_s10  ;;  %627 = vrot.lane.b32.xlu0 %v621_v31, %s1010_s11 }
 0x24b   : > { %v812_v33 = vpop.f32.mrf.mxu0 }
 0x24c   : > { %817 = vst.msk [vmem:[%s309_s9] sm:$0x3f] %vm816_vm7, %v812_v33 }
 0x24d   : > { %v972_v34 = vpop.f32.mrf.mxu0 }
 0x2bc   : > { %v628_v35 = vpop.permute.xlu0 %627  ;;  %v626_v38 = vpop.permute.xlu1 %625 }
 0x2bd   : > { %v630_v36 = vcombine.low %v621_v31, %v628_v35 }
 0x2bf   : > { %v637_v37 = vrot.slane %v630_v36, %v1071_v18 }
 0x2c1   : > { %v639_v39 = vcombine.low %v637_v37, %v626_v38 }
 0x2c3   : > { %v646_v40 = vrot.slane %v639_v39, %v1101_v49 }
 0x2c5   : > { %v647_v41 = vcombine.high %v646_v40, %v1003_v23  ;;  %649 = vst.msk [vmem:[%s305_s13] sm:$0x7] %vm648_vm8, %v646_v40 }
 0x2c7   : > { %650 = vst.msk [vmem:[%s305_s13 + $0x4] sm:$0x7] %vm648_vm8, %v647_v41 }
 0x2c8 PF: > { %s18_s24 = sadd.s32 1, %s998_s24  }
 0x2c9   : > { %p15_p4 = scmp.ge.s32.totalorder %s18_s24, 4  }
 0x2cb   :  { %17 = sbr.rel (!%p15_p4) target bundleno = 1 (0x1), region = 89 }

</bundles_post_ra>
